<compile_context>
chip_gen: v5e
topology: v5e:2x2
jax: 0.10.0
libtpu: 0.0.40
codegen_flags: <defaults>
</compile_context>

<pallas_src>
import jax
import jax.numpy as jnp
from jax import lax
from jax.experimental import pallas as pl
from jax.experimental.pallas import tpu as pltpu


# -----------------------------------------------------------------------------
# Kernel: TB bags per grid step, fully resident in VMEM
# -----------------------------------------------------------------------------
def dsmil_kernel(bl_ref,               # (TB, 1, 1) int32   per-bag valid lengths
                 x_ref,                # (TB, N, E)         instances
                 w1_ref, b1_ref,       # (E, Qs), (1, Qs)   q_net linear 1
                 w2_ref, b2_ref,       # (Qs, Qs), (1, Qs)  q_net linear 2
                 wc_ref, bc_ref,       # (E, C), (1, C)     instance classifier
                 a_ref,                # out (TB, N, C)     attention (softmax over N)
                 bag_ref,              # out (TB, C, E)     bag embeddings B
                 im_ref):              # out (TB, 1, C)     I_m (max instance logits)
    TB, N, E = x_ref.shape
    Qs = w1_ref.shape[1]
    C = wc_ref.shape[1]
    neg_inf = jnp.float32(-jnp.inf)

    x = x_ref[...].astype(jnp.float32)                  # (TB, N, E)
    xf = x.reshape(TB * N, E)                           # feed the MXU TB*N rows

    # ---- q_net: Linear -> ReLU -> Linear -> Tanh (flattened slab) -------------
    cdt = w1_ref.dtype                                  # bf16 weights OK on v6e/v7x
    h = jnp.dot(xf.astype(cdt), w1_ref[...],
                preferred_element_type=jnp.float32) + b1_ref[...].astype(jnp.float32)
    h = jnp.maximum(h, 0.0)
    q = jnp.tanh(jnp.dot(h.astype(cdt), w2_ref[...],
                         preferred_element_type=jnp.float32)
                 + b2_ref[...].astype(jnp.float32))     # (TB*N, Qs)

    # ---- instance classifier (f32 so the max/argmax matches the reference) ----
    inst = (jnp.dot(xf, wc_ref[...].astype(jnp.float32),
                    preferred_element_type=jnp.float32)
            + bc_ref[...].astype(jnp.float32))          # (TB*N, C)

    q = q.reshape(TB, N, Qs)
    inst = inst.reshape(TB, N, C)

    # ---- mask padded instances: Inst[i, bag_lens[i]:, :] = -inf ---------------
    row_ids = lax.broadcasted_iota(jnp.int32, (TB, N, C), 1)
    valid = row_ids < bl_ref[...]                       # (TB, N, C)
    inst_m = jnp.where(valid, inst, neg_inf)

    i_m = jnp.max(inst_m, axis=1, keepdims=True)        # (TB, 1, C)
    # First-max index (torch.max tie semantics) without lax.argmax:
    m_id = jnp.min(jnp.where(inst_m == i_m, row_ids, N),
                   axis=1, keepdims=True)               # (TB, 1, C)

    # ---- critical-instance query gather via N-contraction one-hot matmul ------
    onehot = (row_ids == m_id).astype(jnp.float32)      # (TB, N, C)
    q_m = lax.dot_general(onehot, q, (((1,), (1,)), ((0,), (0,))),
                          preferred_element_type=jnp.float32)    # (TB, C, Qs)

    # ---- attention scores, mask, softmax over instances (axis=1) --------------
    att = lax.dot_general(q, q_m, (((2,), (2,)), ((0,), (0,))),
                          preferred_element_type=jnp.float32)    # (TB, N, C)
    att = jnp.where(valid, att, neg_inf)
    # TODO(synk): bag_lens[i] == 0 gives an all -inf column -> NaN softmax,
    # identical to the PyTorch module; semantics intentionally preserved.
    a_max = jnp.max(att, axis=1, keepdims=True)
    ea = jnp.exp(att - a_max)
    denom = jnp.sum(ea, axis=1, keepdims=True)
    a_soft = ea * pl.reciprocal(denom, approx=True)     # divide on the EUP slot

    # ---- bag embedding: B = A^T @ V  (V = x since v_identity=True) ------------
    bag = lax.dot_general(a_soft, x, (((1,), (1,)), ((0,), (0,))),
                          preferred_element_type=jnp.float32)    # (TB, C, E)

    a_ref[...] = a_soft.astype(a_ref.dtype)
    bag_ref[...] = bag.astype(bag_ref.dtype)
    im_ref[...] = i_m.astype(im_ref.dtype)


# -----------------------------------------------------------------------------
# Wrapper
# -----------------------------------------------------------------------------
def _pick_tb(B, N):
    # Enough rows to fill a 256-row MXU (v6e/v7x; also covers v5e's 128) while
    # keeping >= 2 grid steps so both v7x TensorCores get work.
    return max(1, min(256 // max(N, 1), pl.cdiv(B, 2)))


def dsmil_forward(x, bag_lens, params, *, tb=None):
    B, N, E = x.shape
    Qs = params["w1"].shape[1]
    C = params["wc"].shape[1]

    if tb is None:
        tb = _pick_tb(B, N)
    # Per-step x tile = tb*N*E*4 bytes, double-buffered; with tb*N <= 256 this
    # is far below the scoped-VMEM default on every generation (incl. v7x's
    # smaller 64 MiB physical VMEM), so no vmem_limit_bytes override is needed.

    # Pad the bag axis to a multiple of tb.  Padded bags are marked "full"
    # (length N) so they stay on the NaN-free path, then sliced off.
    n_steps = pl.cdiv(B, tb)
    Bp = n_steps * tb
    if Bp != B:
        x = jnp.pad(x, ((0, Bp - B), (0, 0), (0, 0)))
        bag_lens = jnp.pad(bag_lens, (0, Bp - B), constant_values=N)
    bl3 = bag_lens.astype(jnp.int32).reshape(Bp, 1, 1)

    flops = 2 * Bp * N * (E * Qs + Qs * Qs + E * C) + 2 * Bp * N * C * (2 * Qs + E)
    transcendentals = Bp * N * (Qs + C)                 # tanh + exp
    bytes_accessed = 4 * (Bp * N * E + Bp * N * C + Bp * C * E + Bp * C + Bp
                          + E * Qs + Qs * Qs + E * C + 2 * Qs + C)

    a_p, bag_p, im_p = pl.pallas_call(
        dsmil_kernel,
        grid=(n_steps,),
        in_specs=[
            pl.BlockSpec((tb, 1, 1), lambda i: (i, 0, 0)),    # bag lengths
            pl.BlockSpec((tb, N, E), lambda i: (i, 0, 0)),    # x (bag batch tile)
            # Constant index maps: weights stay resident in VMEM across steps.
            pl.BlockSpec((E, Qs),  lambda i: (0, 0)),         # w1
            pl.BlockSpec((1, Qs),  lambda i: (0, 0)),         # b1
            pl.BlockSpec((Qs, Qs), lambda i: (0, 0)),         # w2
            pl.BlockSpec((1, Qs),  lambda i: (0, 0)),         # b2
            pl.BlockSpec((E, C),   lambda i: (0, 0)),         # wc
            pl.BlockSpec((1, C),   lambda i: (0, 0)),         # bc
        ],
        out_specs=(
            pl.BlockSpec((tb, N, C), lambda i: (i, 0, 0)),    # A
            pl.BlockSpec((tb, C, E), lambda i: (i, 0, 0)),    # B (bag embedding)
            pl.BlockSpec((tb, 1, C), lambda i: (i, 0, 0)),    # I_m
        ),
        out_shape=(
            jax.ShapeDtypeStruct((Bp, N, C), jnp.float32),
            jax.ShapeDtypeStruct((Bp, C, E), jnp.float32),
            jax.ShapeDtypeStruct((Bp, 1, C), jnp.float32),
        ),
        compiler_params=pltpu.CompilerParams(dimension_semantics=("parallel",)),
        cost_estimate=pl.CostEstimate(flops=int(flops),
                                      transcendentals=int(transcendentals),
                                      bytes_accessed=int(bytes_accessed)),
    )(bl3, x, params["w1"], params["b1"], params["w2"], params["b2"],
      params["wc"], params["bc"])

    return a_p[:B], bag_p[:B], im_p[:B].reshape(B, C)


# -----------------------------------------------------------------------------
# Pure-JAX reference (mirrors the PyTorch forward)
# -----------------------------------------------------------------------------
def dsmil_reference(x, bag_lens, params):
    B, N, E = x.shape
    h = jnp.maximum(x @ params["w1"] + params["b1"], 0.0)
    q = jnp.tanh(h @ params["w2"] + params["b2"])                   # (B, N, Qs)
    inst = x @ params["wc"] + params["bc"]                          # (B, N, C)

    valid = jnp.arange(N)[None, :, None] < bag_lens[:, None, None]  # (B, N, 1)
    inst_m = jnp.where(valid, inst, -jnp.inf)
    i_m = jnp.max(inst_m, axis=1)                                   # (B, C)
    m_id = jnp.argmax(inst_m, axis=1)                               # (B, C)

    onehot = jax.nn.one_hot(m_id, N, dtype=x.dtype)                 # (B, C, N)
    q_m = jnp.einsum("bcn,bnq->bcq", onehot, q)                     # (B, C, Qs)
    A = jnp.einsum("bnq,bcq->bnc", q, q_m)                          # (B, N, C)
    A = jnp.where(valid, A, -jnp.inf)
    A = jax.nn.softmax(A, axis=1)
    Bag = jnp.einsum("bnc,bne->bce", A, x)                          # (B, C, E)
    return A, Bag, i_m


# -----------------------------------------------------------------------------
# Main
# -----------------------------------------------------------------------------
if __name__ == "__main__":
    # Small shapes consistent with the module (embedding_size=E, q_size=Qs,
    # num_classes=C, v_identity=True so V == x, preproc = Identity).
    B, N, E, Qs, C = 4, 8, 128, 128, 2

    key = jax.random.PRNGKey(0)
    k_x, k_w1, k_b1, k_w2, k_b2, k_wc, k_bc = jax.random.split(key, 7)

    x = jax.random.normal(k_x, (B, N, E), dtype=jnp.float32)
    bag_lens = jnp.array([6, 8, 3, 8], dtype=jnp.int32)

    params = {
        "w1": jax.random.normal(k_w1, (E, Qs), dtype=jnp.float32) * 0.05,
        "b1": jax.random.normal(k_b1, (1, Qs), dtype=jnp.float32) * 0.05,
        "w2": jax.random.normal(k_w2, (Qs, Qs), dtype=jnp.float32) * 0.05,
        "b2": jax.random.normal(k_b2, (1, Qs), dtype=jnp.float32) * 0.05,
        "wc": jax.random.normal(k_wc, (E, C), dtype=jnp.float32) * 0.05,
        "bc": jax.random.normal(k_bc, (1, C), dtype=jnp.float32) * 0.05,
    }

    A, Bag, Im = jax.block_until_ready(dsmil_forward(x, bag_lens, params))

    A_ref, Bag_ref, Im_ref = dsmil_reference(x, bag_lens, params)
    assert A.shape == (B, N, C) and Bag.shape == (B, C, E) and Im.shape == (B, C)
    assert jnp.allclose(A, A_ref, atol=2e-2, rtol=2e-2)
    assert jnp.allclose(Bag, Bag_ref, atol=2e-2, rtol=2e-2)
    assert jnp.allclose(Im, Im_ref, atol=2e-2, rtol=2e-2)

    print("KERNEL_OK")
</pallas_src>

<mosaic_0001>
module attributes {stable_mosaic.version = 11 : i64} {
  func.func @dsmil_kernel(%arg0: i32, %arg1: memref<2x1x1xi32, #tpu.memory_space<vmem>>, %arg2: memref<2x8x128xf32, #tpu.memory_space<vmem>>, %arg3: memref<128x128xf32, #tpu.memory_space<vmem>>, %arg4: memref<1x128xf32, #tpu.memory_space<vmem>>, %arg5: memref<128x128xf32, #tpu.memory_space<vmem>>, %arg6: memref<1x128xf32, #tpu.memory_space<vmem>>, %arg7: memref<128x2xf32, #tpu.memory_space<vmem>>, %arg8: memref<1x2xf32, #tpu.memory_space<vmem>>, %arg9: memref<2x8x2xf32, #tpu.memory_space<vmem>>, %arg10: memref<2x2x128xf32, #tpu.memory_space<vmem>>, %arg11: memref<2x1x2xf32, #tpu.memory_space<vmem>>) attributes {dimension_semantics = [#tpu.dimension_semantics<parallel>], iteration_bounds = array<i64: 2>, scalar_prefetch = 0 : i64, scratch_operands = 0 : i64, tpu.core_type = #tpu.core_type<tc>, window_params = [{transform_indices = @transform_0, window_bounds = array<i64: 2, 1, 1>}, {transform_indices = @transform_1, window_bounds = array<i64: 2, 8, 128>}, {pipeline_mode = #tpu.pipeline_mode<synchronous>, transform_indices = @transform_2, window_bounds = array<i64: 128, 128>}, {pipeline_mode = #tpu.pipeline_mode<synchronous>, transform_indices = @transform_3, window_bounds = array<i64: 1, 128>}, {pipeline_mode = #tpu.pipeline_mode<synchronous>, transform_indices = @transform_4, window_bounds = array<i64: 128, 128>}, {pipeline_mode = #tpu.pipeline_mode<synchronous>, transform_indices = @transform_5, window_bounds = array<i64: 1, 128>}, {pipeline_mode = #tpu.pipeline_mode<synchronous>, transform_indices = @transform_6, window_bounds = array<i64: 128, 2>}, {pipeline_mode = #tpu.pipeline_mode<synchronous>, transform_indices = @transform_7, window_bounds = array<i64: 1, 2>}, {transform_indices = @transform_8, window_bounds = array<i64: 2, 8, 2>}, {transform_indices = @transform_9, window_bounds = array<i64: 2, 2, 128>}, {transform_indices = @transform_10, window_bounds = array<i64: 2, 1, 2>}]} {
    %c0 = arith.constant 0 : index
    %c0_0 = arith.constant 0 : index
    %c0_1 = arith.constant 0 : index
    %0 = vector.load %arg2[%c0, %c0_0, %c0_1] : memref<2x8x128xf32, #tpu.memory_space<vmem>>, vector<2x8x128xf32>
    %1 = vector.shape_cast %0 : vector<2x8x128xf32> to vector<16x128xf32>
    %c0_2 = arith.constant 0 : index
    %c0_3 = arith.constant 0 : index
    %2 = vector.load %arg3[%c0_2, %c0_3] : memref<128x128xf32, #tpu.memory_space<vmem>>, vector<128x128xf32>
    %cst = arith.constant dense<0.000000e+00> : vector<16x128xf32>
    %3 = tpu.matmul %1, %2, %cst {dimension_numbers = #tpu.dot_dimension_numbers<[1], [0], [0], [1], [0, 0, 1, 1], [], []>} : vector<16x128xf32>, vector<128x128xf32>, vector<16x128xf32> -> vector<16x128xf32>
    %c0_4 = arith.constant 0 : index
    %c0_5 = arith.constant 0 : index
    %4 = vector.load %arg4[%c0_4, %c0_5] : memref<1x128xf32, #tpu.memory_space<vmem>>, vector<1x128xf32>
    %5 = vector.broadcast %4 : vector<1x128xf32> to vector<16x128xf32>
    %6 = arith.addf %3, %5 : vector<16x128xf32>
    %cst_6 = arith.constant 0.000000e+00 : f32
    %7 = vector.broadcast %cst_6 : f32 to vector<16x128xf32>
    %8 = arith.maximumf %6, %7 : vector<16x128xf32>
    %c0_7 = arith.constant 0 : index
    %c0_8 = arith.constant 0 : index
    %9 = vector.load %arg5[%c0_7, %c0_8] : memref<128x128xf32, #tpu.memory_space<vmem>>, vector<128x128xf32>
    %cst_9 = arith.constant dense<0.000000e+00> : vector<16x128xf32>
    %10 = tpu.matmul %8, %9, %cst_9 {dimension_numbers = #tpu.dot_dimension_numbers<[1], [0], [0], [1], [0, 0, 1, 1], [], []>} : vector<16x128xf32>, vector<128x128xf32>, vector<16x128xf32> -> vector<16x128xf32>
    %c0_10 = arith.constant 0 : index
    %c0_11 = arith.constant 0 : index
    %11 = vector.load %arg6[%c0_10, %c0_11] : memref<1x128xf32, #tpu.memory_space<vmem>>, vector<1x128xf32>
    %12 = vector.broadcast %11 : vector<1x128xf32> to vector<16x128xf32>
    %13 = arith.addf %10, %12 : vector<16x128xf32>
    %14 = math.tanh %13 : vector<16x128xf32>
    %c0_12 = arith.constant 0 : index
    %c0_13 = arith.constant 0 : index
    %15 = vector.load %arg7[%c0_12, %c0_13] : memref<128x2xf32, #tpu.memory_space<vmem>>, vector<128x2xf32>
    %cst_14 = arith.constant dense<0.000000e+00> : vector<16x2xf32>
    %16 = tpu.matmul %1, %15, %cst_14 {dimension_numbers = #tpu.dot_dimension_numbers<[1], [0], [0], [1], [0, 0, 1, 1], [], []>} : vector<16x128xf32>, vector<128x2xf32>, vector<16x2xf32> -> vector<16x2xf32>
    %c0_15 = arith.constant 0 : index
    %c0_16 = arith.constant 0 : index
    %17 = vector.load %arg8[%c0_15, %c0_16] : memref<1x2xf32, #tpu.memory_space<vmem>>, vector<1x2xf32>
    %18 = vector.broadcast %17 : vector<1x2xf32> to vector<16x2xf32>
    %19 = arith.addf %16, %18 : vector<16x2xf32>
    %20 = vector.shape_cast %14 : vector<16x128xf32> to vector<2x8x128xf32>
    %21 = vector.shape_cast %19 : vector<16x2xf32> to vector<2x8x2xf32>
    %22 = tpu.iota {dimensions = array<i32: 1>} : vector<2x8x2xi32>
    %c0_17 = arith.constant 0 : index
    %c0_18 = arith.constant 0 : index
    %c0_19 = arith.constant 0 : index
    %23 = vector.load %arg1[%c0_17, %c0_18, %c0_19] : memref<2x1x1xi32, #tpu.memory_space<vmem>>, vector<2x1x1xi32>
    %24 = vector.broadcast %23 : vector<2x1x1xi32> to vector<2x8x2xi32>
    %25 = arith.cmpi slt, %22, %24 : vector<2x8x2xi32>
    %cst_20 = arith.constant 0xFF800000 : f32
    %26 = vector.broadcast %cst_20 : f32 to vector<2x8x2xf32>
    %27 = arith.select %25, %21, %26 : vector<2x8x2xi1>, vector<2x8x2xf32>
    %cst_21 = arith.constant dense<0xFF800000> : vector<2x2xf32>
    %28 = vector.multi_reduction <maximumf>, %27, %cst_21 [1] : vector<2x8x2xf32> to vector<2x2xf32>
    %29 = vector.shape_cast %28 : vector<2x2xf32> to vector<2x1x2xf32>
    %30 = vector.broadcast %29 : vector<2x1x2xf32> to vector<2x8x2xf32>
    %31 = arith.cmpf oeq, %27, %30 : vector<2x8x2xf32>
    %c8_i32 = arith.constant 8 : i32
    %32 = vector.broadcast %c8_i32 : i32 to vector<2x8x2xi32>
    %33 = arith.select %31, %22, %32 : vector<2x8x2xi1>, vector<2x8x2xi32>
    %cst_22 = arith.constant dense<2147483647> : vector<2x2xi32>
    %34 = vector.multi_reduction <minsi>, %33, %cst_22 [1] : vector<2x8x2xi32> to vector<2x2xi32>
    %35 = vector.shape_cast %34 : vector<2x2xi32> to vector<2x1x2xi32>
    %36 = vector.broadcast %35 : vector<2x1x2xi32> to vector<2x8x2xi32>
    %37 = arith.cmpi eq, %22, %36 : vector<2x8x2xi32>
    %38 = arith.extui %37 : vector<2x8x2xi1> to vector<2x8x2xi32>
    %39 = arith.sitofp %38 : vector<2x8x2xi32> to vector<2x8x2xf32>
    %cst_23 = arith.constant dense<0.000000e+00> : vector<2x2x128xf32>
    %40 = tpu.matmul %39, %20, %cst_23 {dimension_numbers = #tpu.dot_dimension_numbers<[1], [1], [2], [2], [0, 0, 0, 2, 1, 2], [0], [0]>} : vector<2x8x2xf32>, vector<2x8x128xf32>, vector<2x2x128xf32> -> vector<2x2x128xf32>
    %cst_24 = arith.constant dense<0.000000e+00> : vector<2x8x2xf32>
    %41 = tpu.matmul %20, %40, %cst_24 {dimension_numbers = #tpu.dot_dimension_numbers<[2], [2], [1], [1], [0, 0, 0, 1, 1, 1], [0], [0]>} : vector<2x8x128xf32>, vector<2x2x128xf32>, vector<2x8x2xf32> -> vector<2x8x2xf32>
    %cst_25 = arith.constant 0xFF800000 : f32
    %42 = vector.broadcast %cst_25 : f32 to vector<2x8x2xf32>
    %43 = arith.select %25, %41, %42 : vector<2x8x2xi1>, vector<2x8x2xf32>
    %cst_26 = arith.constant dense<0xFF800000> : vector<2x2xf32>
    %44 = vector.multi_reduction <maximumf>, %43, %cst_26 [1] : vector<2x8x2xf32> to vector<2x2xf32>
    %45 = vector.shape_cast %44 : vector<2x2xf32> to vector<2x1x2xf32>
    %46 = vector.broadcast %45 : vector<2x1x2xf32> to vector<2x8x2xf32>
    %47 = arith.subf %43, %46 : vector<2x8x2xf32>
    %48 = math.exp %47 : vector<2x8x2xf32>
    %cst_27 = arith.constant dense<0.000000e+00> : vector<2x2xf32>
    %49 = vector.multi_reduction <add>, %48, %cst_27 [1] : vector<2x8x2xf32> to vector<2x2xf32>
    %50 = vector.shape_cast %49 : vector<2x2xf32> to vector<2x1x2xf32>
    %51 = tpu.reciprocal %50 {approx = true} : vector<2x1x2xf32> -> vector<2x1x2xf32>
    %52 = vector.broadcast %51 : vector<2x1x2xf32> to vector<2x8x2xf32>
    %53 = arith.mulf %48, %52 : vector<2x8x2xf32>
    %cst_28 = arith.constant dense<0.000000e+00> : vector<2x2x128xf32>
    %54 = tpu.matmul %53, %0, %cst_28 {dimension_numbers = #tpu.dot_dimension_numbers<[1], [1], [2], [2], [0, 0, 0, 2, 1, 2], [0], [0]>} : vector<2x8x2xf32>, vector<2x8x128xf32>, vector<2x2x128xf32> -> vector<2x2x128xf32>
    %c0_29 = arith.constant 0 : index
    %c0_30 = arith.constant 0 : index
    %c0_31 = arith.constant 0 : index
    %55 = vector.load %arg9[%c0_29, %c0_30, %c0_31] : memref<2x8x2xf32, #tpu.memory_space<vmem>>, vector<2x8x2xf32>
    tpu.vector_store %arg9[%c0_29, %c0_30, %c0_31], %53 {strides = array<i32>} : memref<2x8x2xf32, #tpu.memory_space<vmem>>, vector<2x8x2xf32>,
    %c0_32 = arith.constant 0 : index
    %c0_33 = arith.constant 0 : index
    %c0_34 = arith.constant 0 : index
    %56 = vector.load %arg10[%c0_32, %c0_33, %c0_34] : memref<2x2x128xf32, #tpu.memory_space<vmem>>, vector<2x2x128xf32>
    tpu.vector_store %arg10[%c0_32, %c0_33, %c0_34], %54 {strides = array<i32>} : memref<2x2x128xf32, #tpu.memory_space<vmem>>, vector<2x2x128xf32>,
    %c0_35 = arith.constant 0 : index
    %c0_36 = arith.constant 0 : index
    %c0_37 = arith.constant 0 : index
    %57 = vector.load %arg11[%c0_35, %c0_36, %c0_37] : memref<2x1x2xf32, #tpu.memory_space<vmem>>, vector<2x1x2xf32>
    tpu.vector_store %arg11[%c0_35, %c0_36, %c0_37], %29 {strides = array<i32>} : memref<2x1x2xf32, #tpu.memory_space<vmem>>, vector<2x1x2xf32>,
    return
  }
  func.func @transform_0(%arg0: i32) -> (i32, i32, i32) {
    %c0_i32 = arith.constant 0 : i32
    %c0_i32_0 = arith.constant 0 : i32
    %c0_i32_1 = arith.constant 0 : i32
    return %arg0, %c0_i32, %c0_i32_0 : i32, i32, i32
  }
  func.func @transform_1(%arg0: i32) -> (i32, i32, i32) {
    %c0_i32 = arith.constant 0 : i32
    %c0_i32_0 = arith.constant 0 : i32
    %c0_i32_1 = arith.constant 0 : i32
    return %arg0, %c0_i32, %c0_i32_0 : i32, i32, i32
  }
  func.func @transform_2(%arg0: i32) -> (i32, i32) {
    %c0_i32 = arith.constant 0 : i32
    %c0_i32_0 = arith.constant 0 : i32
    %c0_i32_1 = arith.constant 0 : i32
    return %c0_i32, %c0_i32_0 : i32, i32
  }
  func.func @transform_3(%arg0: i32) -> (i32, i32) {
    %c0_i32 = arith.constant 0 : i32
    %c0_i32_0 = arith.constant 0 : i32
    %c0_i32_1 = arith.constant 0 : i32
    return %c0_i32, %c0_i32_0 : i32, i32
  }
  func.func @transform_4(%arg0: i32) -> (i32, i32) {
    %c0_i32 = arith.constant 0 : i32
    %c0_i32_0 = arith.constant 0 : i32
    %c0_i32_1 = arith.constant 0 : i32
    return %c0_i32, %c0_i32_0 : i32, i32
  }
  func.func @transform_5(%arg0: i32) -> (i32, i32) {
    %c0_i32 = arith.constant 0 : i32
    %c0_i32_0 = arith.constant 0 : i32
    %c0_i32_1 = arith.constant 0 : i32
    return %c0_i32, %c0_i32_0 : i32, i32
  }
  func.func @transform_6(%arg0: i32) -> (i32, i32) {
    %c0_i32 = arith.constant 0 : i32
    %c0_i32_0 = arith.constant 0 : i32
    %c0_i32_1 = arith.constant 0 : i32
    return %c0_i32, %c0_i32_0 : i32, i32
  }
  func.func @transform_7(%arg0: i32) -> (i32, i32) {
    %c0_i32 = arith.constant 0 : i32
    %c0_i32_0 = arith.constant 0 : i32
    %c0_i32_1 = arith.constant 0 : i32
    return %c0_i32, %c0_i32_0 : i32, i32
  }
  func.func @transform_8(%arg0: i32) -> (i32, i32, i32) {
    %c0_i32 = arith.constant 0 : i32
    %c0_i32_0 = arith.constant 0 : i32
    %c0_i32_1 = arith.constant 0 : i32
    return %arg0, %c0_i32, %c0_i32_0 : i32, i32, i32
  }
  func.func @transform_9(%arg0: i32) -> (i32, i32, i32) {
    %c0_i32 = arith.constant 0 : i32
    %c0_i32_0 = arith.constant 0 : i32
    %c0_i32_1 = arith.constant 0 : i32
    return %arg0, %c0_i32, %c0_i32_0 : i32, i32, i32
  }
  func.func @transform_10(%arg0: i32) -> (i32, i32, i32) {
    %c0_i32 = arith.constant 0 : i32
    %c0_i32_0 = arith.constant 0 : i32
    %c0_i32_1 = arith.constant 0 : i32
    return %arg0, %c0_i32, %c0_i32_0 : i32, i32, i32
  }
}

</mosaic_0001>

<bundles_post_ra>
// kernel: tpu_custom_call.1
= control target key start
LH: loop header
LB: loop body
LE: loop exit
PB: predicated region body
PF: predicated region fallthrough
CT: control target
= control target key end

     0   :  { %s1745_s0 = inlined_call_operand.vmem [shape: s32[4,1,1], index: 0, kind: input, shape index: {}]   ;;  %s1746_s1 = inlined_call_operand.hbm [shape: f32[4,8,128], index: 1, kind: input, shape index: {}]   ;;  %s1747_s2 = inlined_call_operand.vmem [shape: f32[128,128], index: 2, kind: input, shape index: {}]   ;;  %s1748_s3 = inlined_call_operand.vmem [shape: f32[1,128], index: 3, kind: input, shape index: {}]   ;;  %s1749_s4 = inlined_call_operand.hbm [shape: f32[128,128], index: 4, kind: input, shape index: {}]   ;;  %s1750_s5 = inlined_call_operand.vmem [shape: f32[1,128], index: 5, kind: input, shape index: {}]   ;;  %s1751_s6 = inlined_call_operand.vmem [shape: f32[128,2], index: 6, kind: input, shape index: {}]   ;;  %s1752_s7 = inlined_call_operand.vmem [shape: f32[1,2], index: 7, kind: input, shape index: {}]   ;;  %s1753_s8 = inlined_call_operand.vmem [shape: f32[4,8,2], index: 8, kind: output, shape index: {0}]   ;;  %s1754_s9 = inlined_call_operand.hbm [shape: f32[4,2,128], index: 9, kind: output, shape index: {1}]   ;;  %s1755_s10 = inlined_call_operand.vmem [shape: f32[4,1,2], index: 10, kind: output, shape index: {2}]  }
   0x1   :  { %1760 = sst [smem:[#allocation14_spill]] %s1749_s4 }
   0x2   :  { %16 = vsyncpa [#allocation3], 0 }
   0x3   :  { %18 = vsyncpa [#allocation3 + $0x1], 0 }
   0x4   :  { %19 = vsyncpa [#allocation6], 0 }
   0x5   :  { %20 = vsyncpa [#allocation4], 0 }
   0x6   :  { %22 = vsyncpa [#allocation4 + $0x1], 0  ;;  %s1420_s13 = smov 0   ;;  %s1422_s14 = smov 0  }
   0x7   :  { %s1424_s15 = smov 0   ;;  %s1426_s16 = smov 0  }
   0x8 LB: > { %1761 = sst [smem:[#allocation11_spill]] %s1352_s15  ;;  %s1441_s17 = sadd.s32 4294967295, %s1356_s16   ;;  %s1356_s16 = sphi %s1426_s16, %s1779_s16   ;;  %s1352_s15 = sphi %s1424_s15, %s1778_s15   ;;  %s1348_s14 = sphi %s1422_s14, %s1777_s14   ;;  %s1344_s13 = sphi %s1420_s13, %s1776_s13  }
   0x9   : > { %s1117_s18 = sadd.s32 4294967294, %s1356_s16   ;;  %p74_p0 = scmp.ne.s32.totalorder %s1348_s14, %s1344_s13 }
   0xa   : > { %p75_p1 = scmp.eq.s32.totalorder %s1441_s17, 0  ;;  %p250_p2 = scmp.eq.s32.totalorder %s1441_s17, 1 }
   0xb   : > { %p256_p3 = scmp.eq.s32.totalorder %s1117_s18, 1  ;;  %p1118_p5 = scmp.ge.s32.totalorder %s1356_s16, 1 }
   0xc   : > { %p1450_p4 = por %p75_p1, %p74_p0  ;;  %p289_p7 = scmp.lt.s32.totalorder %s1356_s16, 3 }
   0xd   : > { %p1455_p6 = por %p256_p3, %p74_p0  ;;  %s1765_s4 = sld [smem:[#allocation14_spill]] }
   0xe   : > { %p1463_p8 = pnand %p1118_p5, %p289_p7  ;;  %s1358_s25 = smov [#allocation5]  }
   0xf   : > { %s1763_s20 = scalar_select %p1455_p6, 1, 0 }
  0x10   : > { %p1153_p9 = pneg %p1463_p8  ;;  %s308_s26 = sshll.u32 %s1358_s25, 4  ;;  %s309_s26 = int_to_ptr.vmem [resolvable:$true] %s308_s26 }
  0x11   : > { %1764 = sst [smem:[#allocation12_spill]] %s1763_s20  ;;  %s1473_s27 = sadd.s32 1, %s1356_s16  }
  0x12   : > { %p1154_p10 = pnand %p1153_p9, %p75_p1  ;;  %s1757_s28 = smov 128  }
  0x13   : > { %s306_s23 = sshll.u32 %s1765_s4, 4  ;;  %s1758_s29 = smov 8   ;;  %s307_s23 = int_to_ptr.hbm [resolvable:$true] %s306_s23 }
  0x14   : > { %1156 = dma.hbm_to_vmem [thread:$0]  (!%p1154_p10), %s307_s23, 2048, %s309_s26, [#allocation6], %s1757_s28, %s1757_s28, %s1758_s29  }
  0x15   : > { %s58_s30 = ssub.s32 %s1356_s16, %s1473_s27  ;;  %s61_s11 = sadd.s32 1, %s1352_s15 }
  0x16   : > { %p59_p12 = scmp.eq.s32.totalorder %s58_s30, 0  ;;  %p68_p13 = scmp.ne.s32.totalorder %s1352_s15, %s1348_s14 }
  0x17   : > { %p69_p0 = scmp.eq.s32.totalorder %s1356_s16, 0  ;;  %p1166_p5 = scmp.lt.s32.totalorder %s1356_s16, 2 }
  0x18   : > { %s1485_s12 = scalar_select %p59_p12, %s1352_s15, %s61_s11  }
  0x19   : > { %p1489_p3 = por %p250_p2, %p68_p13  ;;  %s339_s21 = sand.u32 1, %s1352_s15  }
  0x1a   : > { %1767 = sst [smem:[#allocation13_spill]] %s1485_s12  ;;  %s1143_s22 = sshll.u32 %s1356_s16, 4 }
  0x1b   : > { %p70_p7 = por %p69_p0, %p68_p13  ;;  %s1121_s25 = sshll.u32 %s339_s21, 4 }
  0x1c   : > { %s348_s23 = scalar_lea.hbm %s1746_s1, %s1143_s22  ;;  %s343_s30 = scalar_lea.vmem [#allocation2], %s1121_s25 }
  0x1d   : > { %s349_s26 = sshll.u32 %s348_s23, 4  ;;  %s351_s28 = sshll.u32 %s343_s30, 4  ;;  %s350_s26 = int_to_ptr.hbm [resolvable:$true] %s349_s26  ;;  %s352_s28 = int_to_ptr.vmem [resolvable:$true] %s351_s28 }
  0x1e   : > { %p1499_p9 = pnand %p1166_p5, %p70_p7  ;;  %s340_s29 = scalar_lea.sflag [#allocation3], %s339_s21 }
  0x1f   : > { %s1256_s12 = sshra.s32 %s350_s26, 4  ;;  %s1263_s22 = scalar_lea.hbm %s1746_s1, 32  ;;  %s1257_s12 = int_to_ptr.hbm [resolvable:$true] %s1256_s12 }
  0x20   : > { %s1258_s15 = scalar_lea.hbm %s1257_s12, 16  ;;  %p1260_p10 = pneg %p1499_p9 }
  0x21   : > { %p1259_p2 = scmp.ne.s32.totalorder %s1257_s12, %s1258_s15  ;;  %p1264_p0 = scmp.lt.s32.totalorder %s1257_s12, %s1746_s1 }
  0x22   : > { %p1265_p5 = scmp.lt.s32.totalorder %s1263_s22, %s1258_s15 }
  0x23   : > { %p1261_p12 = pnand %p1260_p10, %p1259_p2 }
  0x24   : > { %p1266_p7 = por %p1265_p5, %p1264_p0 }
  0x25   : > { %p1262_p13 = pneg %p1261_p12 }
  0x27   : > { %p1267_p11 = pnand %p1266_p7, %p1262_p13 }
  0x29   : > { %1270 = shalt.err (!%p1267_p11)
}
  0x2a   : > { %s1770_s21 = smov 8   ;;  %s1771_s30 = smov 128  }
  0x2b   : > { %1160 = dma.hbm_to_vmem [thread:$0]  (!%p1499_p9), %s350_s26, 256, %s352_s28, %s340_s29, %s1771_s30, %s1771_s30, %s1770_s21  }
  0x2c   : > { %363 = sbr.rel (%p1463_p8) target bundleno = 1026 (0x402), region = 52  ;;  %s1519_s4 = sand.u32 (!%p1463_p8), 1, %s1348_s14  }
  0x2d   : > { %s1125_s12 = sshll.u32 (!%p1463_p8), %s1519_s4, 4  ;;  %s366_s15 = scalar_lea.sflag (!%p1463_p8), [#allocation3], %s1519_s4 }
  0x2e   : > { %s1523_s20 = scalar_lea.vmem (!%p1463_p8), [#allocation2], %s1125_s12 }
  0x31   : > { %1331 = dma.done.wait (%p1450_p4), %s366_s15, 256  }
  0x32   : > { %1333 = vsyncadd (%p1450_p4), %s366_s15, 4294967040 }
  0x33   : > { %1335 = dma.done.wait (%p75_p1), [#allocation6], 2048  }
  0x34   : > { %1337 = vsyncadd (%p75_p1), [#allocation6], 4294965248  ;;  %s1128_s24 = sshll.u32 %s1441_s17, 1  ;;  %v550_v0 = vld [vmem:[%s1751_s6 + $0x78] sm:$0xff]  ;;  %v549_v1 = vld [vmem:[%s1751_s6 + $0x70] sm:$0xff]  ;;  %v1361_v8 = vmov 0   ;;  %v578_v37 = vlaneseq }
  0x35   : > { %p426_p8 = scmp.lt.s32.totalorder %s1128_s24, 3  ;;  %555 = vmatpush.msra.mxu2 %v550_v0  ;;  %v548_v2 = vld [vmem:[%s1751_s6 + $0x68] sm:$0xff]  ;;  %v547_v3 = vld [vmem:[%s1751_s6 + $0x60] sm:$0xff]  ;;  %v546_v4 = vld [vmem:[%s1751_s6 + $0x58] sm:$0xff]  ;;  %1208 = vset.pattern.permute.xlu0 %v1361_v8  ;;  %vm594_vm1 = vcmask 15360   ;;  %vm944_vm3 = vcmask 8192  }
  0x36   : > { %v545_v5 = vld [vmem:[%s1751_s6 + $0x50] sm:$0xff]  ;;  %v460_v7 = vld [vmem:[%s1747_s2 + $0x78] sm:$0xff]  ;;  %v544_v10 = vld [vmem:[%s1751_s6 + $0x48] sm:$0xff]  ;;  %v1646_v38 = vshrl.u32 %v578_v37, 7  ;;  %vm671_vm14 = vcmask 64512   ;;  %s1144_s21 = sshll.u32 %s1441_s17, 2 }
  0x37   : > { %s1781_s24 = smov (!%p426_p8, %s1128_s24), 3  ;;  %556 = vmatpush.msra.mxu2 %v549_v1  ;;  %v459_v9 = vld [vmem:[%s1747_s2 + $0x70] sm:$0xff]  ;;  %465 = vmatpush.msra.mxu0 %v460_v7  ;;  %v458_v11 = vld [vmem:[%s1747_s2 + $0x68] sm:$0xff]  ;;  %v543_v12 = vld [vmem:[%s1751_s6 + $0x40] sm:$0xff]  ;;  %s972_s12 = scalar_lea.hbm %s1754_s9, %s1144_s21 }
  0x38   : > { %s428_s28 = scalar_lea.vmem %s1745_s0, %s1781_s24  ;;  %v457_v13 = vld [vmem:[%s1747_s2 + $0x60] sm:$0xff]  ;;  %v542_v14 = vld [vmem:[%s1751_s6 + $0x38] sm:$0xff]  ;;  %v541_v17 = vld [vmem:[%s1751_s6 + $0x30] sm:$0xff]  ;;  %s1671_s15 = scalar_lea.vmem %s1755_s10, %s1781_s24 }
  0x39   : > { %557 = vmatpush.msra.mxu2 %v548_v2  ;;  %v1209_v6 = vld [vmem:[%s428_s28] ss:$0 sm:$0xff]  ;;  %466 = vmatpush.msra.mxu0 %v459_v9  ;;  %v1210_v15 = vld [vmem:[%s428_s28 + $0x1] ss:$0 sm:$0xff]  ;;  %v456_v16 = vld [vmem:[%s1747_s2 + $0x58] sm:$0xff]  ;;  %s1130_s19 = sshll.u32 %s1781_s24, 3 }
  0x3a   : > { %585 = vperm.xlu0 %1208, %v1209_v6   ;;  %v455_v18 = vld [vmem:[%s1747_s2 + $0x50] sm:$0xff]  ;;  %v540_v19 = vld [vmem:[%s1751_s6 + $0x28] sm:$0xff]  ;;  %v539_v21 = vld [vmem:[%s1751_s6 + $0x20] sm:$0xff]  ;;  %s435_s23 = scalar_lea.vmem %s1753_s8, %s1130_s19  ;;  %s1127_s24 = sshll.u32 %s1519_s4, 2 }
  0x3b   : > { %558 = vmatpush.msra.mxu2 %v547_v3  ;;  %467 = vmatpush.msra.mxu0 %v458_v11  ;;  %v454_v20 = vld [vmem:[%s1747_s2 + $0x48] sm:$0xff]  ;;  %v453_v22 = vld [vmem:[%s1747_s2 + $0x40] sm:$0xff]  ;;  %v538_v23 = vld [vmem:[%s1751_s6 + $0x18] sm:$0xff]  ;;  %s975_s26 = sshll.u32 %s972_s12, 4  ;;  %s953_s28 = scalar_lea.sflag [#allocation4], %s1519_s4  ;;  %s976_s26 = int_to_ptr.hbm [resolvable:$true] %s975_s26 }
  0x3c   : > { %v452_v24 = vld [vmem:[%s1747_s2 + $0x38] sm:$0xff]  ;;  %v537_v25 = vld [vmem:[%s1751_s6 + $0x10] sm:$0xff]  ;;  %v536_v27 = vld [vmem:[%s1751_s6 + $0x8] sm:$0xff]  ;;  %s1300_s11 = sshra.s32 %s976_s26, 4  ;;  %s1306_s25 = scalar_lea.hbm %s1754_s9, 8  ;;  %s1301_s11 = int_to_ptr.hbm [resolvable:$true] %s1300_s11 }
  0x3d   : > { %559 = vmatpush.msra.mxu2 %v546_v4  ;;  %468 = vmatpush.msra.mxu0 %v457_v13  ;;  %v451_v26 = vld [vmem:[%s1747_s2 + $0x30] sm:$0xff]  ;;  %v450_v28 = vld [vmem:[%s1747_s2 + $0x28] sm:$0xff]  ;;  %v535_v29 = vld [vmem:[%s1751_s6] sm:$0xff]  ;;  %s1302_s19 = scalar_lea.hbm %s1301_s11, 4  ;;  %p1307_p9 = scmp.lt.s32.totalorder %s1301_s11, %s1754_s9 }
  0x3e   : > { %v1622_v30 = vld [vmem:[%s1523_s20] sm:$0xff]  ;;  %v448_v32 = vld [vmem:[%s1747_s2 + $0x18] sm:$0xff]  ;;  %v446_v34 = vld [vmem:[%s1747_s2 + $0x8] sm:$0xff]  ;;  %p1303_p1 = scmp.ne.s32.totalorder %s1301_s11, %s1302_s19  ;;  %p1308_p2 = scmp.lt.s32.totalorder %s1306_s25, %s1302_s19 }
  0x3f   : > { %560 = vmatpush.msra.mxu2 %v545_v5  ;;  %469 = vmatpush.msra.mxu0 %v456_v16  ;;  %v449_v31 = vld [vmem:[%s1747_s2 + $0x20] sm:$0xff]  ;;  %v447_v33 = vld [vmem:[%s1747_s2 + $0x10] sm:$0xff]  ;;  %v1638_v35 = vld [vmem:[%s1523_s20 + $0x8] sm:$0xff] }
  0x40   : > { %v445_v36 = vld [vmem:[%s1747_s2] sm:$0xff]  ;;  %v505_v41 = vld [vmem:[#allocation5 + $0x78] sm:$0xff]  ;;  %v504_v42 = vld [vmem:[#allocation5 + $0x70] sm:$0xff]  ;;  %p1304_p4 = pnand %p1303_p1, %p1489_p3  ;;  %p1309_p10 = por %p1308_p2, %p1307_p9 }
  0x41   : > { %561 = vmatpush.msra.mxu2 %v544_v10  ;;  %470 = vmatpush.msra.mxu0 %v455_v18  ;;  %v1211_v40 = vld [vmem:[%s1752_s7] ss:$0 sm:$0xff]  ;;  %v503_v44 = vld [vmem:[#allocation5 + $0x68] sm:$0xff]  ;;  %v501_v49 = vld [vmem:[#allocation5 + $0x58] sm:$0xff] }
  0x42   : > { %588 = vperm.xlu0 %1208, %v1210_v15   ;;  %510 = vmatpush.msra.mxu1 %v505_v41  ;;  %v502_v46 = vld [vmem:[#allocation5 + $0x60] sm:$0xff]  ;;  %v500_v51 = vld [vmem:[#allocation5 + $0x50] sm:$0xff]  ;;  %v499_v55 = vld [vmem:[#allocation5 + $0x48] sm:$0xff]  ;;  %p1305_p11 = pneg %p1304_p4 }
  0x43   : > { %562 = vmatpush.msra.mxu2 %v543_v12  ;;  %471 = vmatpush.msra.mxu0 %v454_v20  ;;  %v498_v58 = vld [vmem:[#allocation5 + $0x40] sm:$0xff]  ;;  %v497_v62 = vld [vmem:[#allocation5 + $0x38] sm:$0xff]  ;;  %v496_v1 = vld [vmem:[#allocation5 + $0x30] sm:$0xff] }
  0x44   : > { %511 = vmatpush.msra.mxu1 %v504_v42  ;;  %v495_v4 = vld [vmem:[#allocation5 + $0x28] sm:$0xff]  ;;  %v494_v8 = vld [vmem:[#allocation5 + $0x20] sm:$0xff]  ;;  %v493_v13 = vld [vmem:[#allocation5 + $0x18] sm:$0xff]  ;;  %p1310_p12 = pnand %p1309_p10, %p1305_p11 }
  0x45   : > { %563 = vmatpush.msra.mxu2 %v542_v14  ;;  %472 = vmatpush.msra.mxu0 %v453_v22  ;;  %v1212_v9 = vld [vmem:[%s1748_s3] ss:$0 sm:$0xff]  ;;  %v492_v16 = vld [vmem:[#allocation5 + $0x10] sm:$0xff]  ;;  %v491_v20 = vld [vmem:[#allocation5 + $0x8] sm:$0xff] }
  0x46   : > { %512 = vmatpush.msra.mxu1 %v503_v44  ;;  %v1213_v44 = vld [vmem:[%s1750_s5] ss:$0 sm:$0xff] }
  0x47   : > { %564 = vmatpush.msra.mxu2 %v541_v17  ;;  %473 = vmatpush.msra.mxu0 %v452_v24 }
  0x48   : > { %513 = vmatpush.msra.mxu1 %v502_v46 }
  0x49   : > { %565 = vmatpush.msra.mxu2 %v540_v19  ;;  %474 = vmatpush.msra.mxu0 %v451_v26 }
  0x4a   : > { %514 = vmatpush.msra.mxu1 %v501_v49 }
  0x4b   : > { %566 = vmatpush.msra.mxu2 %v539_v21  ;;  %475 = vmatpush.msra.mxu0 %v450_v28 }
  0x4c   : > { %515 = vmatpush.msra.mxu1 %v500_v51 }
  0x4d   : > { %567 = vmatpush.msra.mxu2 %v538_v23  ;;  %476 = vmatpush.msra.mxu0 %v449_v31  ;;  %v490_v23 = vld [vmem:[#allocation5] sm:$0xff] }
  0x4e   : > { %516 = vmatpush.msra.mxu1 %v499_v55 }
  0x4f   : > { %568 = vmatpush.msra.mxu2 %v537_v25  ;;  %477 = vmatpush.msra.mxu0 %v448_v32 }
  0x50   : > { %517 = vmatpush.msra.mxu1 %v498_v58 }
  0x51   : > { %569 = vmatpush.msra.mxu2 %v536_v27  ;;  %478 = vmatpush.msra.mxu0 %v447_v33 }
  0x52   : > { %518 = vmatpush.msra.mxu1 %v497_v62 }
  0x53   : > { %570 = vmatpush.msra.mxu2 %v535_v29  ;;  %479 = vmatpush.msra.mxu0 %v446_v34  ;;  %v1362_v34 = vmov 0.0  }
  0x54   : > { %571 = vmatmul.f32.vlgmr.msra.gmra.mxu2 %v1622_v30  ;;  %519 = vmatpush.msra.mxu1 %v496_v1 }
  0x55   : > { %480 = vmatpush.msra.mxu0 %v445_v36 }
  0x56   : > { %481 = vmatmul.f32.vlgmr.msra.gmra.mxu0 %v1622_v30  ;;  %520 = vmatpush.msra.mxu1 %v495_v4 }
  0x58   : > { %521 = vmatpush.msra.mxu1 %v494_v8 }
  0x5a   : > { %522 = vmatpush.msra.mxu1 %v493_v13 }
  0x5c   : > { %574 = vmatmul.f32.gmra.mxu2 %v1638_v35  ;;  %523 = vmatpush.msra.mxu1 %v492_v16 }
  0x5e   : > { %484 = vmatmul.f32.gmra.mxu0 %v1638_v35  ;;  %524 = vmatpush.msra.mxu1 %v491_v20 }
  0x60   : > { %525 = vmatpush.msra.mxu1 %v490_v23 }
  0xac   : > { %v1648_v39 = vpop.permute.xlu0 %585 }
  0xad   : > { %vm590_vm0 = vcmp.lt.s32.totalorder %v1646_v38, %v1648_v39 }
  0xb4   : > { %v1659_v53 = vpop.permute.xlu0 %588 }
  0xb5   : > { %vm591_vm2 = vcmp.lt.s32.totalorder %v1646_v38, %v1659_v53 }
  0xd3   : > { %v482_v6 = vpop.f32.mrf.mxu0 }
  0xd4   : > { %v483_v15 = vadd.f32 %v1212_v9, %v482_v6 }
  0xd6   : > { %v488_v22 = vmax.f32 %v483_v15, 0.0 }
  0xd7   : > { %v572_v43 = vpop.f32.mrf.mxu2 }
  0xd8   : > { %v573_v45 = vadd.f32 %v1211_v40, %v572_v43  ;;  %526 = vmatmul.f32.vlgmr.msra.gmra.mxu1 %v488_v22 }
  0xda   : > { %v592_v47 = vsel %vm590_vm0, %v573_v45, -inf }
  0xdb   : > { %v595_v48 = vsel %vm594_vm1, %v592_v47, -inf  ;;  %v485_v26 = vpop.f32.mrf.mxu0 }
  0xdc   : > { %v596_v50 = vrot.slane %v595_v48, 4  ;;  %v486_v29 = vadd.f32 %v1212_v9, %v485_v26 }
  0xde   : > { %v597_v52 = vmax.f32 %v595_v48, %v596_v50  ;;  %v489_v37 = vmax.f32 %v486_v29, 0.0 }
  0xdf   : > { %v575_v54 = vpop.f32.mrf.mxu2 }
  0xe0   : > { %v598_v56 = vrot.slane %v597_v52, 2  ;;  %v576_v57 = vadd.f32 %v1211_v40, %v575_v54  ;;  %529 = vmatmul.f32.gmra.mxu1 %v489_v37 }
  0xe2   : > { %v599_v59 = vmax.f32 %v597_v52, %v598_v56  ;;  %v593_v60 = vsel %vm591_vm2, %v576_v57, -inf }
  0xe3   : > { %v602_v61 = vsel %vm594_vm1, %v593_v60, -inf }
  0xe4   : > { %v600_v63 = vrot.slane %v599_v59, 1  ;;  %v603_v0 = vrot.slane %v602_v61, 4 }
  0xe6   : > { %v601_v2 = vmax.f32 %v599_v59, %v600_v63  ;;  %v604_v3 = vmax.f32 %v602_v61, %v603_v0 }
  0xe8   : > { %vm609_vm4 = vcmp.eq.f32.partialorder %v592_v47, %v601_v2  ;;  %945 = vst.msk [vmem:[%s1671_s15] sm:$0x1] %vm944_vm3, %v601_v2  ;;  %v605_v5 = vrot.slane %v604_v3, 2 }
  0xe9   : > { %v611_v7 = vsel %vm609_vm4, %v1646_v38, 8 }
  0xea   : > { %v613_v10 = vsel %vm594_vm1, %v611_v7, 2147483647  ;;  %v606_v11 = vmax.f32 %v604_v3, %v605_v5 }
  0xeb   : > { %v614_v12 = vrot.slane %v613_v10, 4 }
  0xec   : > { %v607_v14 = vrot.slane %v606_v11, 1 }
  0xed   : > { %vm615_vm5 = vcmp.lt.s32.totalorder %v613_v10, %v614_v12 }
  0xee   : > { %v608_v17 = vmax.f32 %v606_v11, %v607_v14  ;;  %v616_v18 = vsel %vm615_vm5, %v613_v10, %v614_v12 }
  0xef   : > { %v617_v19 = vrot.slane %v616_v18, 2 }
  0xf0   : > { %vm610_vm6 = vcmp.eq.f32.partialorder %v593_v60, %v608_v17  ;;  %946 = vst.msk [vmem:[%s1671_s15 + $0x1] sm:$0x1] %vm944_vm3, %v608_v17  ;;  %s418_s15 = scalar_lea.vmem [#allocation7], %s1127_s24 }
  0xf1   : > { %v612_v21 = vsel %vm610_vm6, %v1646_v38, 8  ;;  %vm618_vm7 = vcmp.lt.s32.totalorder %v616_v18, %v617_v19  ;;  %s973_s29 = sshll.u32 %s418_s15, 4  ;;  %s974_s29 = int_to_ptr.vmem [resolvable:$true] %s973_s29 }
  0xf2   : > { %v623_v24 = vsel %vm594_vm1, %v612_v21, 2147483647  ;;  %v619_v25 = vsel %vm618_vm7, %v616_v18, %v617_v19 }
  0xf3   : > { %v624_v27 = vrot.slane %v623_v24, 4  ;;  %v620_v28 = vrot.slane %v619_v25, 1 }
  0xf5   : > { %vm625_vm8 = vcmp.lt.s32.totalorder %v623_v24, %v624_v27  ;;  %vm621_vm9 = vcmp.lt.s32.totalorder %v619_v25, %v620_v28 }
  0xf6   : > { %v622_v31 = vsel %vm621_vm9, %v619_v25, %v620_v28  ;;  %v626_v32 = vsel %vm625_vm8, %v623_v24, %v624_v27 }
  0xf7   : > { %vm633_vm10 = vcmp.eq.s32.totalorder %v1646_v38, %v622_v31  ;;  %v627_v33 = vrot.slane %v626_v32, 2 }
  0xf8   : > { %v1132_v36 = vsel %vm633_vm10, 1.0, %v1362_v34 }
  0xf9   : > { %639 = vxpose.xlu1.b32.start.end [1/1] (short) (narrow) %v1132_v36, 8  ;;  %vm628_vm11 = vcmp.lt.s32.totalorder %v626_v32, %v627_v33 }
  0xfa   : > { %v629_v40 = vsel %vm628_vm11, %v626_v32, %v627_v33 }
  0xfb   : > { %v630_v41 = vrot.slane %v629_v40, 1 }
  0xfd   : > { %vm631_vm12 = vcmp.lt.s32.totalorder %v629_v40, %v630_v41 }
  0xfe   : > { %v632_v42 = vsel %vm631_vm12, %v629_v40, %v630_v41 }
  0xff   : > { %vm634_vm13 = vcmp.eq.s32.totalorder %v1646_v38, %v632_v42 }
 0x100   : > { %v1133_v43 = vsel %vm634_vm13, 1.0, %v1362_v34 }
 0x101   : > { %695 = vxpose.xlu1.b32.start.end [1/1] (short) (narrow) %v1133_v43, 8 }
 0x155   : > { %v527_v45 = vpop.f32.mrf.mxu1 }
 0x156   : > { %v528_v46 = vadd.f32 %v1213_v44, %v527_v45 }
 0x158   : > { %1214 = vtanh.f32 %v528_v46 }
 0x15d   : > { %v530_v47 = vpop.f32.mrf.mxu1 }
 0x15e   : > { %v1215_v48 = vpop.eup %1214  ;;  %v531_v49 = vadd.f32 %v1213_v44, %v530_v47 }
 0x15f   : > { %690 = vmatpush.msra.mxu3 %v1215_v48 }
 0x160   : > { %1216 = vtanh.f32 %v531_v49 }
 0x166   : > { %v1217_v50 = vpop.eup %1216 }
 0x167   : > { %745 = vmatpush.msrb.mxu3 %v1217_v50 }
 0x19d   : > { %v655_v51 = vpop.trf.xlu1 }
 0x19e   : > { %1134 = vmatmul.msk.f32.vlgmr.msra.gmra.mxu3 %vm671_vm14, %v655_v51 }
 0x1a5   : > { %v711_v52 = vpop.trf.xlu1 }
 0x1a6   : > { %1135 = vmatmul.msk.f32.vlgmr.msrb.gmra.mxu3 %vm671_vm14, %v711_v52 }
 0x221   : > { %v692_v54 = vpop.f32.mrf.mxu3 }
 0x222   : > { %765 = vmatpush.xpose.msra.mxu3 %v692_v54 }
 0x225   : > { %766 = vmatmul.f32.vlgmr.msra.gmra.mxu3 %v1215_v48 }
 0x229   : > { %v747_v55 = vpop.f32.mrf.mxu3 }
 0x22a   : > { %785 = vmatpush.xpose.msrb.mxu3 %v747_v55 }
 0x22d   : > { %786 = vmatmul.f32.vlgmr.msrb.gmra.mxu3 %v1217_v50 }
 0x22e   : > { %880 = vmatpush.msra.mxu3 %v1622_v30 }
 0x230   : > { %935 = vmatpush.msrb.mxu3 %v1638_v35 }
 0x2a8   : > { %v767_v56 = vpop.f32.mrf.mxu3 }
 0x2a9   : > { %v790_v57 = vsel %vm590_vm0, %v767_v56, -inf }
 0x2aa   : > { %v792_v58 = vsel %vm594_vm1, %v790_v57, -inf }
 0x2ab   : > { %v793_v59 = vrot.slane %v792_v58, 4 }
 0x2ad   : > { %v794_v60 = vmax.f32 %v792_v58, %v793_v59 }
 0x2af   : > { %v795_v61 = vrot.slane %v794_v60, 2 }
 0x2b0   : > { %v787_v62 = vpop.f32.mrf.mxu3 }
 0x2b1   : > { %v796_v63 = vmax.f32 %v794_v60, %v795_v61  ;;  %v791_v0 = vsel %vm591_vm2, %v787_v62, -inf }
 0x2b2   : > { %v799_v30 = vsel %vm594_vm1, %v791_v0, -inf }
 0x2b3   : > { %v797_v1 = vrot.slane %v796_v63, 1  ;;  %v800_v35 = vrot.slane %v799_v30, 4 }
 0x2b5   : > { %v798_v2 = vmax.f32 %v796_v63, %v797_v1  ;;  %v801_v3 = vmax.f32 %v799_v30, %v800_v35 }
 0x2b7   : > { %v806_v4 = vsub.f32 %v790_v57, %v798_v2  ;;  %v802_v39 = vrot.slane %v801_v3, 2 }
 0x2b9   : > { %v808_v5 = vmul.f32 1.442695, %v806_v4  ;;  %v803_v6 = vmax.f32 %v801_v3, %v802_v39 }
 0x2bb   : > { %1218 = vpow2.f32 %v808_v5  ;;  %v804_v7 = vrot.slane %v803_v6, 1 }
 0x2bd   : > { %v805_v8 = vmax.f32 %v803_v6, %v804_v7 }
 0x2bf   : > { %v807_v9 = vsub.f32 %v791_v0, %v805_v8 }
 0x2c1   : > { %v1219_v10 = vpop.eup %1218  ;;  %v810_v11 = vmul.f32 1.442695, %v807_v9 }
 0x2c2   : > { %v812_v38 = vsel %vm594_vm1, %v1219_v10, 0.0 }
 0x2c3   : > { %v813_v53 = vrot.slane %v812_v38, 4  ;;  %1220 = vpow2.f32 %v810_v11 }
 0x2c5   : > { %v814_v12 = vadd.f32 %v813_v53, %v812_v38 }
 0x2c7   : > { %v815_v13 = vrot.slane %v814_v12, 2 }
 0x2c9   : > { %v1221_v14 = vpop.eup %1220  ;;  %v816_v15 = vadd.f32 %v815_v13, %v814_v12 }
 0x2ca   : > { %v819_v16 = vsel %vm594_vm1, %v1221_v14, 0.0 }
 0x2cb   : > { %v820_v17 = vrot.slane %v819_v16, 4  ;;  %v817_v18 = vrot.slane %v816_v15, 1 }
 0x2cd   : > { %v821_v19 = vadd.f32 %v820_v17, %v819_v16  ;;  %v818_v20 = vadd.f32 %v817_v18, %v816_v15 }
 0x2cf   : > { %v822_v21 = vrot.slane %v821_v19, 2  ;;  %1222 = vrcp.f32 %v818_v20 }
 0x2d1   : > { %v823_v22 = vadd.f32 %v822_v21, %v821_v19 }
 0x2d3   : > { %v824_v23 = vrot.slane %v823_v22, 1 }
 0x2d5   : > { %v1223_v24 = vpop.eup %1222  ;;  %v825_v25 = vadd.f32 %v824_v23, %v823_v22 }
 0x2d6   : > { %v828_v26 = vmul.f32 %v1223_v24, %v1219_v10 }
 0x2d7   : > { %1224 = vrcp.f32 %v825_v25 }
 0x2d8   : > { %830 = vxpose.xlu2.b32.start.end [1/1] (short) (narrow) %v828_v26, 8  ;;  %940 = vst.msk [vmem:[%s435_s23] sm:$0xff] %vm594_vm1, %v828_v26 }
 0x2dd   : > { %v1225_v27 = vpop.eup %1224 }
 0x2de   : > { %v829_v28 = vmul.f32 %v1225_v27, %v1221_v14 }
 0x2e0   : > { %885 = vxpose.xlu2.b32.start.end [1/1] (short) (narrow) %v829_v28, 8  ;;  %941 = vst.msk [vmem:[%s435_s23 + $0x8] sm:$0xff] %vm594_vm1, %v829_v28 }
 0x371   : > { %v846_v29 = vpop.trf.xlu2 }
 0x372   : > { %1136 = vmatmul.msk.f32.vlgmr.msra.gmra.mxu3 %vm671_vm14, %v846_v29 }
 0x379   : > { %v901_v31 = vpop.trf.xlu2 }
 0x37a   : > { %1137 = vmatmul.msk.f32.vlgmr.msrb.gmra.mxu3 %vm671_vm14, %v901_v31 }
 0x3f5   : > { %v882_v32 = vpop.f32.mrf.mxu3 }
 0x3f6   : > { %942 = vst [vmem:[%s418_s15] sm:$0x3] %v882_v32 }
 0x3fd   : > { %v937_v33 = vpop.f32.mrf.mxu3 }
 0x3fe   : > { %943 = vst [vmem:[%s418_s15 + $0x2] sm:$0x3] %v937_v33 }
 0x3ff   : > { %1313 = shalt.err (!%p1310_p12)
}
 0x400   : > { %s1363_s4 = smov 32   ;;  %s1364_s21 = smov 2  }
 0x401   : > { %1151 = dma.vmem_to_hbm [thread:$0]  (%p1489_p3), %s974_s29, 64, %s976_s26, %s953_s28, %s1363_s4, %s1363_s4, %s1364_s21  }
 0x402 PF: > { %s1002_s30 = sand.u32 1, %s1344_s13   ;;  %p1773_p13 = scmp.ge.s32.totalorder %s1356_s16, 2 }
 0x403   : > { %s1003_s12 = scalar_lea.sflag [#allocation4], %s1002_s30 }
 0x404   : > { %p1162_p0 = pnand %p1773_p13, %p1455_p6 }
 0x406   : > { %p1163_p5 = pneg %p1162_p0 }
 0x408   : > { %1339 = dma.done.wait (%p1163_p5), %s1003_s12, 64  }
 0x409   : > { %1341 = vsyncadd (%p1163_p5), %s1003_s12, 4294967232  ;;  %s1774_s15 = sld [smem:[#allocation11_spill]]  ;;  %p25_p7 = scmp.ge.s32.totalorder %s1473_s27, 4  }
 0x40a   : > { %s1775_s11 = sld [smem:[#allocation13_spill]]  ;;  %s1776_s13 = smov %s1348_s14 }
 0x40b   : > { %s1779_s16 = smov %s1473_s27 }
 0x40c   :  { %27 = sbr.rel (!%p25_p7) target bundleno = 8 (0x8), region = 128 }
 0x40f   : > { %s1777_s14 = smov %s1774_s15 }
 0x410   : > { %s1778_s15 = smov %s1775_s11 }
 0x411   :  { %1016 = vsyncpa [#allocation3], 1 }
 0x412   :  { %1018 = vsyncpa [#allocation3 + $0x1], 1 }
 0x413   :  { %1019 = vsyncpa [#allocation6], 1 }
 0x414   :  { %1020 = vsyncpa [#allocation4], 1 }
 0x415   :  { %1022 = vsyncpa [#allocation4 + $0x1], 1 }

</bundles_post_ra>
